<compile_context>
chip_gen: v6e
topology: v6e:2x2x1
jax: 0.10.0
libtpu: 0.0.40
codegen_flags: <defaults>
</compile_context>

<pallas_src>
import jax
import jax.numpy as jnp
from jax.experimental import pallas as pl
from jax.experimental.pallas import tpu as pltpu

VOCAB = 128   # multiple of 128 -> lane-dense logits stores
BATCH = 2
SEQ = 8       # B*T = 16, multiple of 8 -> sublane-dense f32 block

_SMEM = pltpu.MemorySpace.SMEM
_VMEM = pltpu.MemorySpace.VMEM


def _row_splat_eq(ids_ref, n, v):
    """(n, v) bool mask with mask[i, j] = (j == ids_ref[i]).

    ids_ref lives in SMEM; each row's id is splatted from a scalar (free
    scalar path) and merged with a sublane-index select -- no vector DMA,
    no XLU work.  Static unroll over n (= 16 here); for large n switch to a
    row-tiled grid instead.
    """
    col = jax.lax.broadcasted_iota(jnp.int32, (n, v), 1)   # lane index
    row = jax.lax.broadcasted_iota(jnp.int32, (n, v), 0)   # sublane index
    ids = jnp.zeros((n, v), jnp.int32)
    for i in range(n):
        ids = jnp.where(row == i, ids_ref[i], ids)
    return col == ids


def _logits_kernel(ix_ref, table_ref, logits_ref):
    """Embedding lookup only (targt is None path)."""
    n, v = logits_ref.shape
    onehot = _row_splat_eq(ix_ref, n, v).astype(jnp.float32)   # (N, V)
    # Exact gather: one 1.0 per row, f32 MXU accumulation.
    logits_ref[...] = jnp.dot(onehot, table_ref[...],
                              preferred_element_type=jnp.float32)


def _logits_loss_kernel(ix_ref, tgt_ref, table_ref, logits_ref, loss_ref,
                        acc_ref):
    """Embedding lookup + mean cross-entropy, single gridless block."""
    n, v = logits_ref.shape
    onehot = _row_splat_eq(ix_ref, n, v).astype(jnp.float32)   # (N, V)
    tmask = _row_splat_eq(tgt_ref, n, v)                       # (N, V) bool

    logits = jnp.dot(onehot, table_ref[...],
                     preferred_element_type=jnp.float32)       # (N, V) f32
    logits_ref[...] = logits              # lane+sublane-dense (16,128) store

    # Batched cross-entropy: mean_i [ logsumexp(logits_i) - logits_i[tgt_i] ]
    m = jnp.max(logits, axis=-1, keepdims=True)                # (N, 1)
    lse = m + jnp.log(jnp.sum(jnp.exp(logits - m), axis=-1, keepdims=True))
    logit_t = jnp.sum(jnp.where(tmask, logits, 0.0),
                      axis=-1, keepdims=True)                  # (N, 1)
    nll = lse - logit_t                                        # (N, 1)

    # Mean -> SMEM scalar output.  Route through a (1,1) VMEM scratch so we
    # only rely on keepdims reductions + scalar element read of a ref.
    acc_ref[...] = jnp.sum(nll, axis=0, keepdims=True) * (1.0 / n)
    loss_ref[0, 0] = acc_ref[0, 0]


def bigram_forward(table, ix, targt=None):
    """Pallas equivalent of BigramLanguageModel.forward.

    table : (V, V) float32 embedding table (nn.Embedding(vocab, vocab).weight)
    ix    : (B, T) int32 token ids
    targt : optional (B, T) int32 targets

    Returns (logits, loss):
      - targt is None : logits (B, T, V), loss None
      - else          : logits (B*T, V), loss scalar (mean cross-entropy)
    (matches the PyTorch module, which reshapes logits before returning when
     targets are given)

    Note: out-of-range token ids silently yield an all-zero logits row rather
    than erroring like nn.Embedding; inputs are assumed trusted.
    """
    B, T = ix.shape
    V = table.shape[0]
    N = B * T

    ix_flat = ix.reshape(N).astype(jnp.int32)

    if targt is None:
        logits = pl.pallas_call(
            _logits_kernel,
            out_shape=jax.ShapeDtypeStruct((N, V), jnp.float32),
            in_specs=[
                pl.BlockSpec(memory_space=_SMEM),   # token ids (scalars)
                pl.BlockSpec(memory_space=_VMEM),   # full (V, V) table
            ],
            out_specs=pl.BlockSpec(memory_space=_VMEM),
        )(ix_flat, table)
        return logits.reshape(B, T, V), None

    tgt_flat = targt.reshape(N).astype(jnp.int32)
    logits, loss = pl.pallas_call(
        _logits_loss_kernel,
        out_shape=(
            jax.ShapeDtypeStruct((N, V), jnp.float32),
            jax.ShapeDtypeStruct((1, 1), jnp.float32),
        ),
        in_specs=[
            pl.BlockSpec(memory_space=_SMEM),       # token ids (scalars)
            pl.BlockSpec(memory_space=_SMEM),       # targets (scalars)
            pl.BlockSpec(memory_space=_VMEM),       # full (V, V) table
        ],
        out_specs=(
            pl.BlockSpec(memory_space=_VMEM),       # (16,128) dense logits
            pl.BlockSpec(memory_space=_SMEM),       # scalar loss
        ),
        scratch_shapes=[pltpu.VMEM((1, 1), jnp.float32)],
    )(ix_flat, tgt_flat, table)
    return logits, loss[0, 0]


def _reference_forward(table, ix, targt):
    """Pure-JAX reference for correctness checking."""
    logits = table[ix]                                   # (B, T, V)
    B, T, V = logits.shape
    lf = logits.reshape(B * T, V)
    tf = targt.reshape(B * T)
    lse = jax.scipy.special.logsumexp(lf, axis=-1)
    nll = lse - jnp.take_along_axis(lf, tf[:, None], axis=-1)[:, 0]
    return lf, jnp.mean(nll)


if __name__ == "__main__":
    key = jax.random.PRNGKey(0)
    k_tab, k_ix, k_tg = jax.random.split(key, 3)

    # nn.Embedding default init ~ N(0, 1)
    table = jax.random.normal(k_tab, (VOCAB, VOCAB), dtype=jnp.float32)
    ix = jax.random.randint(k_ix, (BATCH, SEQ), 0, VOCAB, dtype=jnp.int32)
    targt = jax.random.randint(k_tg, (BATCH, SEQ), 0, VOCAB, dtype=jnp.int32)

    # forward with targets (logits flattened to (B*T, V), scalar loss)
    logits, loss = bigram_forward(table, ix, targt)
    jax.block_until_ready((logits, loss))

    # forward without targets (logits (B, T, V), loss None)
    logits_nt, loss_nt = bigram_forward(table, ix, None)
    jax.block_until_ready(logits_nt)
    assert loss_nt is None
    assert logits_nt.shape == (BATCH, SEQ, VOCAB)

    # sanity check against pure-JAX reference
    ref_logits, ref_loss = _reference_forward(table, ix, targt)
    assert jnp.allclose(logits, ref_logits, atol=1e-5, rtol=1e-5)
    assert jnp.allclose(loss, ref_loss, atol=1e-5, rtol=1e-5)
    assert jnp.allclose(logits_nt.reshape(BATCH * SEQ, VOCAB), ref_logits,
                        atol=1e-5, rtol=1e-5)

    # TODO(synk): `genarate` (autoregressive multinomial sampling loop) is
    # host-side control flow around the forward pass; to amortize per-call
    # dispatch it should batch tokens and/or fuse softmax + sampling
    # (pltpu.prng_seed / prng_random_bits) into a dedicated kernel.
    print("KERNEL_OK")
</pallas_src>

<mosaic_0001>
module attributes {stable_mosaic.version = 11 : i64} {
  func.func @_logits_loss_kernel(%arg0: memref<16xi32, #tpu.memory_space<smem>>, %arg1: memref<16xi32, #tpu.memory_space<smem>>, %arg2: memref<128x128xf32, #tpu.memory_space<vmem>>, %arg3: memref<16x128xf32, #tpu.memory_space<vmem>>, %arg4: memref<1x1xf32, #tpu.memory_space<smem>>, %arg5: memref<1x1xf32, #tpu.memory_space<vmem>>) attributes {dimension_semantics = [], scalar_prefetch = 0 : i64, scratch_operands = 1 : i64, tpu.core_type = #tpu.core_type<tc>} {
    %0 = tpu.iota {dimensions = array<i32: 1>} : vector<16x128xi32>
    %1 = tpu.iota {dimensions = array<i32: 0>} : vector<16x128xi32>
    %c0_i32 = arith.constant 0 : i32
    %2 = vector.broadcast %c0_i32 : i32 to vector<16x128xi32>
    %c0_i32_0 = arith.constant 0 : i32
    %3 = vector.broadcast %c0_i32_0 : i32 to vector<16x128xi32>
    %4 = arith.cmpi eq, %1, %3 : vector<16x128xi32>
    %c0 = arith.constant 0 : index
    %5 = memref.load %arg0[%c0] : memref<16xi32, #tpu.memory_space<smem>>
    %6 = vector.broadcast %5 : i32 to vector<16x128xi32>
    %7 = arith.select %4, %6, %2 : vector<16x128xi1>, vector<16x128xi32>
    %c1_i32 = arith.constant 1 : i32
    %8 = vector.broadcast %c1_i32 : i32 to vector<16x128xi32>
    %9 = arith.cmpi eq, %1, %8 : vector<16x128xi32>
    %c1 = arith.constant 1 : index
    %10 = memref.load %arg0[%c1] : memref<16xi32, #tpu.memory_space<smem>>
    %11 = vector.broadcast %10 : i32 to vector<16x128xi32>
    %12 = arith.select %9, %11, %7 : vector<16x128xi1>, vector<16x128xi32>
    %c2_i32 = arith.constant 2 : i32
    %13 = vector.broadcast %c2_i32 : i32 to vector<16x128xi32>
    %14 = arith.cmpi eq, %1, %13 : vector<16x128xi32>
    %c2 = arith.constant 2 : index
    %15 = memref.load %arg0[%c2] : memref<16xi32, #tpu.memory_space<smem>>
    %16 = vector.broadcast %15 : i32 to vector<16x128xi32>
    %17 = arith.select %14, %16, %12 : vector<16x128xi1>, vector<16x128xi32>
    %c3_i32 = arith.constant 3 : i32
    %18 = vector.broadcast %c3_i32 : i32 to vector<16x128xi32>
    %19 = arith.cmpi eq, %1, %18 : vector<16x128xi32>
    %c3 = arith.constant 3 : index
    %20 = memref.load %arg0[%c3] : memref<16xi32, #tpu.memory_space<smem>>
    %21 = vector.broadcast %20 : i32 to vector<16x128xi32>
    %22 = arith.select %19, %21, %17 : vector<16x128xi1>, vector<16x128xi32>
    %c4_i32 = arith.constant 4 : i32
    %23 = vector.broadcast %c4_i32 : i32 to vector<16x128xi32>
    %24 = arith.cmpi eq, %1, %23 : vector<16x128xi32>
    %c4 = arith.constant 4 : index
    %25 = memref.load %arg0[%c4] : memref<16xi32, #tpu.memory_space<smem>>
    %26 = vector.broadcast %25 : i32 to vector<16x128xi32>
    %27 = arith.select %24, %26, %22 : vector<16x128xi1>, vector<16x128xi32>
    %c5_i32 = arith.constant 5 : i32
    %28 = vector.broadcast %c5_i32 : i32 to vector<16x128xi32>
    %29 = arith.cmpi eq, %1, %28 : vector<16x128xi32>
    %c5 = arith.constant 5 : index
    %30 = memref.load %arg0[%c5] : memref<16xi32, #tpu.memory_space<smem>>
    %31 = vector.broadcast %30 : i32 to vector<16x128xi32>
    %32 = arith.select %29, %31, %27 : vector<16x128xi1>, vector<16x128xi32>
    %c6_i32 = arith.constant 6 : i32
    %33 = vector.broadcast %c6_i32 : i32 to vector<16x128xi32>
    %34 = arith.cmpi eq, %1, %33 : vector<16x128xi32>
    %c6 = arith.constant 6 : index
    %35 = memref.load %arg0[%c6] : memref<16xi32, #tpu.memory_space<smem>>
    %36 = vector.broadcast %35 : i32 to vector<16x128xi32>
    %37 = arith.select %34, %36, %32 : vector<16x128xi1>, vector<16x128xi32>
    %c7_i32 = arith.constant 7 : i32
    %38 = vector.broadcast %c7_i32 : i32 to vector<16x128xi32>
    %39 = arith.cmpi eq, %1, %38 : vector<16x128xi32>
    %c7 = arith.constant 7 : index
    %40 = memref.load %arg0[%c7] : memref<16xi32, #tpu.memory_space<smem>>
    %41 = vector.broadcast %40 : i32 to vector<16x128xi32>
    %42 = arith.select %39, %41, %37 : vector<16x128xi1>, vector<16x128xi32>
    %c8_i32 = arith.constant 8 : i32
    %43 = vector.broadcast %c8_i32 : i32 to vector<16x128xi32>
    %44 = arith.cmpi eq, %1, %43 : vector<16x128xi32>
    %c8 = arith.constant 8 : index
    %45 = memref.load %arg0[%c8] : memref<16xi32, #tpu.memory_space<smem>>
    %46 = vector.broadcast %45 : i32 to vector<16x128xi32>
    %47 = arith.select %44, %46, %42 : vector<16x128xi1>, vector<16x128xi32>
    %c9_i32 = arith.constant 9 : i32
    %48 = vector.broadcast %c9_i32 : i32 to vector<16x128xi32>
    %49 = arith.cmpi eq, %1, %48 : vector<16x128xi32>
    %c9 = arith.constant 9 : index
    %50 = memref.load %arg0[%c9] : memref<16xi32, #tpu.memory_space<smem>>
    %51 = vector.broadcast %50 : i32 to vector<16x128xi32>
    %52 = arith.select %49, %51, %47 : vector<16x128xi1>, vector<16x128xi32>
    %c10_i32 = arith.constant 10 : i32
    %53 = vector.broadcast %c10_i32 : i32 to vector<16x128xi32>
    %54 = arith.cmpi eq, %1, %53 : vector<16x128xi32>
    %c10 = arith.constant 10 : index
    %55 = memref.load %arg0[%c10] : memref<16xi32, #tpu.memory_space<smem>>
    %56 = vector.broadcast %55 : i32 to vector<16x128xi32>
    %57 = arith.select %54, %56, %52 : vector<16x128xi1>, vector<16x128xi32>
    %c11_i32 = arith.constant 11 : i32
    %58 = vector.broadcast %c11_i32 : i32 to vector<16x128xi32>
    %59 = arith.cmpi eq, %1, %58 : vector<16x128xi32>
    %c11 = arith.constant 11 : index
    %60 = memref.load %arg0[%c11] : memref<16xi32, #tpu.memory_space<smem>>
    %61 = vector.broadcast %60 : i32 to vector<16x128xi32>
    %62 = arith.select %59, %61, %57 : vector<16x128xi1>, vector<16x128xi32>
    %c12_i32 = arith.constant 12 : i32
    %63 = vector.broadcast %c12_i32 : i32 to vector<16x128xi32>
    %64 = arith.cmpi eq, %1, %63 : vector<16x128xi32>
    %c12 = arith.constant 12 : index
    %65 = memref.load %arg0[%c12] : memref<16xi32, #tpu.memory_space<smem>>
    %66 = vector.broadcast %65 : i32 to vector<16x128xi32>
    %67 = arith.select %64, %66, %62 : vector<16x128xi1>, vector<16x128xi32>
    %c13_i32 = arith.constant 13 : i32
    %68 = vector.broadcast %c13_i32 : i32 to vector<16x128xi32>
    %69 = arith.cmpi eq, %1, %68 : vector<16x128xi32>
    %c13 = arith.constant 13 : index
    %70 = memref.load %arg0[%c13] : memref<16xi32, #tpu.memory_space<smem>>
    %71 = vector.broadcast %70 : i32 to vector<16x128xi32>
    %72 = arith.select %69, %71, %67 : vector<16x128xi1>, vector<16x128xi32>
    %c14_i32 = arith.constant 14 : i32
    %73 = vector.broadcast %c14_i32 : i32 to vector<16x128xi32>
    %74 = arith.cmpi eq, %1, %73 : vector<16x128xi32>
    %c14 = arith.constant 14 : index
    %75 = memref.load %arg0[%c14] : memref<16xi32, #tpu.memory_space<smem>>
    %76 = vector.broadcast %75 : i32 to vector<16x128xi32>
    %77 = arith.select %74, %76, %72 : vector<16x128xi1>, vector<16x128xi32>
    %c15_i32 = arith.constant 15 : i32
    %78 = vector.broadcast %c15_i32 : i32 to vector<16x128xi32>
    %79 = arith.cmpi eq, %1, %78 : vector<16x128xi32>
    %c15 = arith.constant 15 : index
    %80 = memref.load %arg0[%c15] : memref<16xi32, #tpu.memory_space<smem>>
    %81 = vector.broadcast %80 : i32 to vector<16x128xi32>
    %82 = arith.select %79, %81, %77 : vector<16x128xi1>, vector<16x128xi32>
    %83 = arith.cmpi eq, %0, %82 : vector<16x128xi32>
    %84 = arith.extui %83 : vector<16x128xi1> to vector<16x128xi32>
    %85 = arith.sitofp %84 : vector<16x128xi32> to vector<16x128xf32>
    %86 = tpu.iota {dimensions = array<i32: 1>} : vector<16x128xi32>
    %87 = tpu.iota {dimensions = array<i32: 0>} : vector<16x128xi32>
    %c0_i32_1 = arith.constant 0 : i32
    %88 = vector.broadcast %c0_i32_1 : i32 to vector<16x128xi32>
    %c0_i32_2 = arith.constant 0 : i32
    %89 = vector.broadcast %c0_i32_2 : i32 to vector<16x128xi32>
    %90 = arith.cmpi eq, %87, %89 : vector<16x128xi32>
    %c0_3 = arith.constant 0 : index
    %91 = memref.load %arg1[%c0_3] : memref<16xi32, #tpu.memory_space<smem>>
    %92 = vector.broadcast %91 : i32 to vector<16x128xi32>
    %93 = arith.select %90, %92, %88 : vector<16x128xi1>, vector<16x128xi32>
    %c1_i32_4 = arith.constant 1 : i32
    %94 = vector.broadcast %c1_i32_4 : i32 to vector<16x128xi32>
    %95 = arith.cmpi eq, %87, %94 : vector<16x128xi32>
    %c1_5 = arith.constant 1 : index
    %96 = memref.load %arg1[%c1_5] : memref<16xi32, #tpu.memory_space<smem>>
    %97 = vector.broadcast %96 : i32 to vector<16x128xi32>
    %98 = arith.select %95, %97, %93 : vector<16x128xi1>, vector<16x128xi32>
    %c2_i32_6 = arith.constant 2 : i32
    %99 = vector.broadcast %c2_i32_6 : i32 to vector<16x128xi32>
    %100 = arith.cmpi eq, %87, %99 : vector<16x128xi32>
    %c2_7 = arith.constant 2 : index
    %101 = memref.load %arg1[%c2_7] : memref<16xi32, #tpu.memory_space<smem>>
    %102 = vector.broadcast %101 : i32 to vector<16x128xi32>
    %103 = arith.select %100, %102, %98 : vector<16x128xi1>, vector<16x128xi32>
    %c3_i32_8 = arith.constant 3 : i32
    %104 = vector.broadcast %c3_i32_8 : i32 to vector<16x128xi32>
    %105 = arith.cmpi eq, %87, %104 : vector<16x128xi32>
    %c3_9 = arith.constant 3 : index
    %106 = memref.load %arg1[%c3_9] : memref<16xi32, #tpu.memory_space<smem>>
    %107 = vector.broadcast %106 : i32 to vector<16x128xi32>
    %108 = arith.select %105, %107, %103 : vector<16x128xi1>, vector<16x128xi32>
    %c4_i32_10 = arith.constant 4 : i32
    %109 = vector.broadcast %c4_i32_10 : i32 to vector<16x128xi32>
    %110 = arith.cmpi eq, %87, %109 : vector<16x128xi32>
    %c4_11 = arith.constant 4 : index
    %111 = memref.load %arg1[%c4_11] : memref<16xi32, #tpu.memory_space<smem>>
    %112 = vector.broadcast %111 : i32 to vector<16x128xi32>
    %113 = arith.select %110, %112, %108 : vector<16x128xi1>, vector<16x128xi32>
    %c5_i32_12 = arith.constant 5 : i32
    %114 = vector.broadcast %c5_i32_12 : i32 to vector<16x128xi32>
    %115 = arith.cmpi eq, %87, %114 : vector<16x128xi32>
    %c5_13 = arith.constant 5 : index
    %116 = memref.load %arg1[%c5_13] : memref<16xi32, #tpu.memory_space<smem>>
    %117 = vector.broadcast %116 : i32 to vector<16x128xi32>
    %118 = arith.select %115, %117, %113 : vector<16x128xi1>, vector<16x128xi32>
    %c6_i32_14 = arith.constant 6 : i32
    %119 = vector.broadcast %c6_i32_14 : i32 to vector<16x128xi32>
    %120 = arith.cmpi eq, %87, %119 : vector<16x128xi32>
    %c6_15 = arith.constant 6 : index
    %121 = memref.load %arg1[%c6_15] : memref<16xi32, #tpu.memory_space<smem>>
    %122 = vector.broadcast %121 : i32 to vector<16x128xi32>
    %123 = arith.select %120, %122, %118 : vector<16x128xi1>, vector<16x128xi32>
    %c7_i32_16 = arith.constant 7 : i32
    %124 = vector.broadcast %c7_i32_16 : i32 to vector<16x128xi32>
    %125 = arith.cmpi eq, %87, %124 : vector<16x128xi32>
    %c7_17 = arith.constant 7 : index
    %126 = memref.load %arg1[%c7_17] : memref<16xi32, #tpu.memory_space<smem>>
    %127 = vector.broadcast %126 : i32 to vector<16x128xi32>
    %128 = arith.select %125, %127, %123 : vector<16x128xi1>, vector<16x128xi32>
    %c8_i32_18 = arith.constant 8 : i32
    %129 = vector.broadcast %c8_i32_18 : i32 to vector<16x128xi32>
    %130 = arith.cmpi eq, %87, %129 : vector<16x128xi32>
    %c8_19 = arith.constant 8 : index
    %131 = memref.load %arg1[%c8_19] : memref<16xi32, #tpu.memory_space<smem>>
    %132 = vector.broadcast %131 : i32 to vector<16x128xi32>
    %133 = arith.select %130, %132, %128 : vector<16x128xi1>, vector<16x128xi32>
    %c9_i32_20 = arith.constant 9 : i32
    %134 = vector.broadcast %c9_i32_20 : i32 to vector<16x128xi32>
    %135 = arith.cmpi eq, %87, %134 : vector<16x128xi32>
    %c9_21 = arith.constant 9 : index
    %136 = memref.load %arg1[%c9_21] : memref<16xi32, #tpu.memory_space<smem>>
    %137 = vector.broadcast %136 : i32 to vector<16x128xi32>
    %138 = arith.select %135, %137, %133 : vector<16x128xi1>, vector<16x128xi32>
    %c10_i32_22 = arith.constant 10 : i32
    %139 = vector.broadcast %c10_i32_22 : i32 to vector<16x128xi32>
    %140 = arith.cmpi eq, %87, %139 : vector<16x128xi32>
    %c10_23 = arith.constant 10 : index
    %141 = memref.load %arg1[%c10_23] : memref<16xi32, #tpu.memory_space<smem>>
    %142 = vector.broadcast %141 : i32 to vector<16x128xi32>
    %143 = arith.select %140, %142, %138 : vector<16x128xi1>, vector<16x128xi32>
    %c11_i32_24 = arith.constant 11 : i32
    %144 = vector.broadcast %c11_i32_24 : i32 to vector<16x128xi32>
    %145 = arith.cmpi eq, %87, %144 : vector<16x128xi32>
    %c11_25 = arith.constant 11 : index
    %146 = memref.load %arg1[%c11_25] : memref<16xi32, #tpu.memory_space<smem>>
    %147 = vector.broadcast %146 : i32 to vector<16x128xi32>
    %148 = arith.select %145, %147, %143 : vector<16x128xi1>, vector<16x128xi32>
    %c12_i32_26 = arith.constant 12 : i32
    %149 = vector.broadcast %c12_i32_26 : i32 to vector<16x128xi32>
    %150 = arith.cmpi eq, %87, %149 : vector<16x128xi32>
    %c12_27 = arith.constant 12 : index
    %151 = memref.load %arg1[%c12_27] : memref<16xi32, #tpu.memory_space<smem>>
    %152 = vector.broadcast %151 : i32 to vector<16x128xi32>
    %153 = arith.select %150, %152, %148 : vector<16x128xi1>, vector<16x128xi32>
    %c13_i32_28 = arith.constant 13 : i32
    %154 = vector.broadcast %c13_i32_28 : i32 to vector<16x128xi32>
    %155 = arith.cmpi eq, %87, %154 : vector<16x128xi32>
    %c13_29 = arith.constant 13 : index
    %156 = memref.load %arg1[%c13_29] : memref<16xi32, #tpu.memory_space<smem>>
    %157 = vector.broadcast %156 : i32 to vector<16x128xi32>
    %158 = arith.select %155, %157, %153 : vector<16x128xi1>, vector<16x128xi32>
    %c14_i32_30 = arith.constant 14 : i32
    %159 = vector.broadcast %c14_i32_30 : i32 to vector<16x128xi32>
    %160 = arith.cmpi eq, %87, %159 : vector<16x128xi32>
    %c14_31 = arith.constant 14 : index
    %161 = memref.load %arg1[%c14_31] : memref<16xi32, #tpu.memory_space<smem>>
    %162 = vector.broadcast %161 : i32 to vector<16x128xi32>
    %163 = arith.select %160, %162, %158 : vector<16x128xi1>, vector<16x128xi32>
    %c15_i32_32 = arith.constant 15 : i32
    %164 = vector.broadcast %c15_i32_32 : i32 to vector<16x128xi32>
    %165 = arith.cmpi eq, %87, %164 : vector<16x128xi32>
    %c15_33 = arith.constant 15 : index
    %166 = memref.load %arg1[%c15_33] : memref<16xi32, #tpu.memory_space<smem>>
    %167 = vector.broadcast %166 : i32 to vector<16x128xi32>
    %168 = arith.select %165, %167, %163 : vector<16x128xi1>, vector<16x128xi32>
    %169 = arith.cmpi eq, %86, %168 : vector<16x128xi32>
    %c0_34 = arith.constant 0 : index
    %c0_35 = arith.constant 0 : index
    %170 = vector.load %arg2[%c0_34, %c0_35] : memref<128x128xf32, #tpu.memory_space<vmem>>, vector<128x128xf32>
    %cst = arith.constant dense<0.000000e+00> : vector<16x128xf32>
    %171 = tpu.matmul %85, %170, %cst {dimension_numbers = #tpu.dot_dimension_numbers<[1], [0], [0], [1], [0, 0, 1, 1], [], []>} : vector<16x128xf32>, vector<128x128xf32>, vector<16x128xf32> -> vector<16x128xf32>
    %c0_36 = arith.constant 0 : index
    %c0_37 = arith.constant 0 : index
    %172 = vector.load %arg3[%c0_36, %c0_37] : memref<16x128xf32, #tpu.memory_space<vmem>>, vector<16x128xf32>
    tpu.vector_store %arg3[%c0_36, %c0_37], %171 {strides = array<i32>} : memref<16x128xf32, #tpu.memory_space<vmem>>, vector<16x128xf32>,
    %cst_38 = arith.constant dense<0xFF800000> : vector<16xf32>
    %173 = vector.multi_reduction <maximumf>, %171, %cst_38 [1] : vector<16x128xf32> to vector<16xf32>
    %174 = vector.shape_cast %173 : vector<16xf32> to vector<16x1xf32>
    %175 = vector.broadcast %174 : vector<16x1xf32> to vector<16x128xf32>
    %176 = arith.subf %171, %175 : vector<16x128xf32>
    %177 = math.exp %176 : vector<16x128xf32>
    %cst_39 = arith.constant dense<0.000000e+00> : vector<16xf32>
    %178 = vector.multi_reduction <add>, %177, %cst_39 [1] : vector<16x128xf32> to vector<16xf32>
    %179 = vector.shape_cast %178 : vector<16xf32> to vector<16x1xf32>
    %180 = math.log %179 : vector<16x1xf32>
    %181 = arith.addf %174, %180 : vector<16x1xf32>
    %cst_40 = arith.constant 0.000000e+00 : f32
    %182 = vector.broadcast %cst_40 : f32 to vector<16x128xf32>
    %183 = arith.select %169, %171, %182 : vector<16x128xi1>, vector<16x128xf32>
    %cst_41 = arith.constant dense<0.000000e+00> : vector<16xf32>
    %184 = vector.multi_reduction <add>, %183, %cst_41 [1] : vector<16x128xf32> to vector<16xf32>
    %185 = vector.shape_cast %184 : vector<16xf32> to vector<16x1xf32>
    %186 = arith.subf %181, %185 : vector<16x1xf32>
    %cst_42 = arith.constant dense<0.000000e+00> : vector<1xf32>
    %187 = vector.multi_reduction <add>, %186, %cst_42 [0] : vector<16x1xf32> to vector<1xf32>
    %188 = vector.shape_cast %187 : vector<1xf32> to vector<1x1xf32>
    %cst_43 = arith.constant 6.250000e-02 : f32
    %189 = vector.broadcast %cst_43 : f32 to vector<1x1xf32>
    %190 = arith.mulf %188, %189 : vector<1x1xf32>
    %c0_44 = arith.constant 0 : index
    %c0_45 = arith.constant 0 : index
    %191 = vector.load %arg5[%c0_44, %c0_45] : memref<1x1xf32, #tpu.memory_space<vmem>>, vector<1x1xf32>
    tpu.vector_store %arg5[%c0_44, %c0_45], %190 {strides = array<i32>} : memref<1x1xf32, #tpu.memory_space<vmem>>, vector<1x1xf32>,
    %c0_46 = arith.constant 0 : index
    %c0_47 = arith.constant 0 : index
    %192 = vector.load %arg5[%c0_46, %c0_47] : memref<1x1xf32, #tpu.memory_space<vmem>>, vector<1x1xf32>
    %193 = vector.extract %192[0, 0] : f32 from vector<1x1xf32>
    %c0_48 = arith.constant 0 : index
    %c0_49 = arith.constant 0 : index
    %194 = memref.load %arg4[%c0_48, %c0_49] : memref<1x1xf32, #tpu.memory_space<smem>>
    memref.store %193, %arg4[%c0_48, %c0_49] : memref<1x1xf32, #tpu.memory_space<smem>>
    return
  }
}

</mosaic_0001>

<bundles_post_ra>
// kernel: tpu_custom_call.1
= control target key start
LH: loop header
LB: loop body
LE: loop exit
PB: predicated region body
PF: predicated region fallthrough
CT: control target
= control target key end

     0   :  { %10 = vsyncpa [#allocation6], 0  ;;  %s759_s0 = inlined_call_operand.hbm [shape: s32[16], index: 0, kind: input, shape index: {}]   ;;  %s760_s1 = inlined_call_operand.vmem [shape: s32[16], index: 1, kind: input, shape index: {}]   ;;  %s761_s2 = inlined_call_operand.hbm [shape: f32[128,128], index: 2, kind: input, shape index: {}]   ;;  %s762_s3 = inlined_call_operand.hbm [shape: f32[16,128], index: 3, kind: output, shape index: {0}]   ;;  %s763_s4 = inlined_call_operand.hbm [shape: f32[1,1], index: 4, kind: output, shape index: {1}]  }
   0x1   :  { %11 = vsyncpa [#allocation8], 0 }
   0x2   :  { %12 = vsyncpa [#allocation4], 0 }
   0x3   :  { %13 = vsyncpa [#allocation5], 0 }
   0x4   :  { %14 = vsyncpa [#allocation7], 0  ;;  %s29_s17 = sshll.u32 %s760_s1, 4  ;;  %s578_s18 = smov [#allocation3]   ;;  %s30_s17 = int_to_ptr.vmem [resolvable:$true] %s29_s17 }
   0x5   :  { %22 = dma.hbm_to_smem %s759_s0, 16, %s578_s18, [#allocation6]  }
   0x6   :  { %s508_s21 = scalar_lea.vmem %s30_s17, 16  ;;  %p513_p1 = scmp.lt.s32.totalorder %s30_s17, %s30_s17 }
   0x7   :  { %p509_p0 = scmp.ne.s32.totalorder %s30_s17, %s508_s21  ;;  %p514_p2 = scmp.lt.s32.totalorder %s508_s21, %s508_s21 }
   0x9   :  { %p515_p3 = por %p514_p2, %p513_p1 }
   0xb   :  { %p516_p4 = pnand %p515_p3, %p509_p0 }
   0xd   :  { %519 = shalt.err (!%p516_p4)
}
   0xe   :  { %s579_s22 = smov [#allocation9]   ;;  %s580_s23 = smov [#allocation10]  }
   0xf   :  { %32 = dma.vmem_to_smem %s30_s17, 16, %s579_s22, [#allocation8]  }
  0x10   :  { %s38_s24 = sshll.u32 %s580_s23, 4  ;;  %s39_s24 = int_to_ptr.vmem [resolvable:$true] %s38_s24 }
  0x11   :  { %s528_s25 = scalar_lea.vmem %s39_s24, 2048  ;;  %p533_p6 = scmp.lt.s32.totalorder %s39_s24, %s39_s24 }
  0x12   :  { %p529_p5 = scmp.ne.s32.totalorder %s39_s24, %s528_s25  ;;  %p534_p7 = scmp.lt.s32.totalorder %s528_s25, %s528_s25 }
  0x14   :  { %p535_p8 = por %p534_p7, %p533_p6 }
  0x16   :  { %p536_p9 = pnand %p535_p8, %p529_p5 }
  0x18   :  { %539 = shalt.err (!%p536_p9)
}
  0x19   :  { %s581_s0 = smov 128   ;;  %s582_s1 = smov 8  }
  0x1a   :  { %44 = dma.hbm_to_vmem [thread:$0]  %s761_s2, 2048, %s39_s24, [#allocation4], %s581_s0, %s581_s0, %s582_s1  }
  0x1b   :  { %568 = dma.done.wait [#allocation6], 16  }
  0x1c   :  { %569 = vsyncadd [#allocation6], 4294967280 }
  0x1d   :  { %570 = dma.done.wait [#allocation8], 16  }
  0x1e   :  { %571 = vsyncadd [#allocation8], 4294967280 }
  0x1f   :  { %572 = dma.done.wait [#allocation4], 2048  }
  0x20   :  { %573 = vsyncadd [#allocation4], 4294965248 }
  0x21   :  { %54 = sfence }
  0x22   :  { %v243_v0 = vld [vmem:[#allocation10 + $0x78] sm:$0xff]  ;;  %v242_v1 = vld [vmem:[#allocation10 + $0x70] sm:$0xff]  ;;  %v55_v2 = vlaneseq  ;;  %s62_s28 = sld [smem:[#allocation3]]  ;;  %v241_v3 = vld [vmem:[#allocation10 + $0x68] sm:$0xff]  ;;  %v583_v34 = vmov 1.0  }
  0x23   :  { %447 = vmatprep.subr.mxu0 %v243_v0  ;;  %s395_s29 = sld [smem:[#allocation3 + $0x1]]  ;;  %v240_v5 = vld [vmem:[#allocation10 + $0x60] sm:$0xff]  ;;  %v239_v6 = vld [vmem:[#allocation10 + $0x58] sm:$0xff]  ;;  %v238_v10 = vld [vmem:[#allocation10 + $0x50] sm:$0xff] }
  0x24   :  { %448 = vmatpush3.msra.mxu0 %v243_v0  ;;  %v623_v4 = vshrl.u32 %v55_v2, 7  ;;  %s396_s30 = sld [smem:[#allocation3 + $0x2]]  ;;  %v237_v13 = vld [vmem:[#allocation10 + $0x48] sm:$0xff]  ;;  %v236_v17 = vld [vmem:[#allocation10 + $0x40] sm:$0xff]  ;;  %v658_v20 = vand.u32 127, %v55_v2  ;;  %v235_v23 = vld [vmem:[#allocation10 + $0x38] sm:$0xff] }
  0x25   :  { %449 = vmatprep.subr.mxu0 %v242_v1  ;;  %s397_s2 = sld [smem:[#allocation3 + $0x3]]  ;;  %v234_v28 = vld [vmem:[#allocation10 + $0x30] sm:$0xff]  ;;  %v233_v33 = vld [vmem:[#allocation10 + $0x28] sm:$0xff]  ;;  %v232_v39 = vld [vmem:[#allocation10 + $0x20] sm:$0xff] }
  0x26   :  { %450 = vmatpush3.msra.mxu0 %v242_v1  ;;  %vm60_vm0 = vcmp.eq.s32.totalorder %v623_v4, 0  ;;  %vm66_vm1 = vcmp.eq.s32.totalorder %v623_v4, 1  ;;  %s627_s5 = sld [smem:[#allocation3 + $0x4]]  ;;  %vm72_vm2 = vcmp.eq.s32.totalorder %v623_v4, 2  ;;  %vm78_vm3 = vcmp.eq.s32.totalorder %v623_v4, 3  ;;  %v231_v44 = vld [vmem:[#allocation10 + $0x18] sm:$0xff] }
  0x27   :  { %451 = vmatprep.subr.mxu0 %v241_v3  ;;  %s632_s6 = sld [smem:[#allocation3 + $0x5]]  ;;  %vm84_vm4 = vcmp.eq.s32.totalorder %v623_v4, 4  ;;  %v645_v15 = vadd.s32 8, %v623_v4  ;;  %vm90_vm5 = vcmp.eq.s32.totalorder %v623_v4, 5  ;;  %vm96_vm6 = vcmp.eq.s32.totalorder %v623_v4, 6  ;;  %v230_v47 = vld [vmem:[#allocation10 + $0x10] sm:$0xff] }
  0x28   :  { %452 = vmatpush3.msra.mxu0 %v241_v3  ;;  %v63_v7 = vstv %s62_s28  ;;  %s636_s7 = sld [smem:[#allocation3 + $0x6]]  ;;  %vm102_vm7 = vcmp.eq.s32.totalorder %v623_v4, 7  ;;  %v229_v50 = vld [vmem:[#allocation10 + $0x8] sm:$0xff]  ;;  %v228_v52 = vld [vmem:[#allocation10] sm:$0xff] }
  0x29   :  { %453 = vmatprep.subr.mxu0 %v240_v5  ;;  %v64_v8 = vsel %vm60_vm0, %v63_v7, 0  ;;  %v69_v9 = vstv %s395_s29  ;;  %s639_s8 = sld [smem:[#allocation3 + $0x7]]  ;;  %vm109_vm8 = vcmp.eq.s32.totalorder %v645_v15, 8  ;;  %vm115_vm9 = vcmp.eq.s32.totalorder %v645_v15, 9 }
  0x2a   :  { %454 = vmatpush3.msra.mxu0 %v240_v5  ;;  %v70_v11 = vsel %vm66_vm1, %v69_v9, %v64_v8  ;;  %v75_v12 = vstv %s396_s30  ;;  %s647_s9 = sld [smem:[#allocation3 + $0x8]]  ;;  %vm121_vm10 = vcmp.eq.s32.totalorder %v645_v15, 10  ;;  %vm127_vm12 = vcmp.eq.s32.totalorder %v645_v15, 11 }
  0x2b   :  { %455 = vmatprep.subr.mxu0 %v239_v6  ;;  %v76_v14 = vsel %vm72_vm2, %v75_v12, %v70_v11  ;;  %v81_v16 = vstv %s397_s2  ;;  %s650_s10 = sld [smem:[#allocation3 + $0x9]]  ;;  %vm133_vm13 = vcmp.eq.s32.totalorder %v645_v15, 12  ;;  %vm764_vm14 = vcmp.eq.s32.totalorder %v645_v15, 13 }
  0x2c   :  { %456 = vmatpush3.msra.mxu0 %v239_v6  ;;  %v82_v18 = vsel %vm78_vm3, %v81_v16, %v76_v14  ;;  %v87_v19 = vstv %s627_s5  ;;  %s656_s11 = sld [smem:[#allocation3 + $0xa]]  ;;  %vm145_vm15 = vcmp.eq.s32.totalorder %v645_v15, 14 }
  0x2d   :  { %457 = vmatprep.subr.mxu0 %v238_v10  ;;  %v88_v21 = vsel %vm84_vm4, %v87_v19, %v82_v18  ;;  %v93_v22 = vstv %s632_s6  ;;  %s664_s12 = sld [smem:[#allocation3 + $0xb]]  ;;  %s584_s6 = smov [#allocation11]  }
  0x2e   :  { %458 = vmatpush3.msra.mxu0 %v238_v10  ;;  %v94_v24 = vsel %vm90_vm5, %v93_v22, %v88_v21  ;;  %v99_v25 = vstv %s636_s7  ;;  %s670_s13 = sld [smem:[#allocation3 + $0xc]]  ;;  %s368_s7 = sshll.u32 %s584_s6, 4  ;;  %s369_s7 = int_to_ptr.vmem [resolvable:$true] %s368_s7 }
  0x2f   :  { %459 = vmatprep.subr.mxu0 %v237_v13  ;;  %v100_v26 = vsel %vm96_vm6, %v99_v25, %v94_v24  ;;  %v105_v27 = vstv %s639_s8  ;;  %s676_s14 = sld [smem:[#allocation3 + $0xd]]  ;;  %s540_s8 = scalar_lea.vmem %s369_s7, 256 }
  0x30   :  { %460 = vmatpush3.msra.mxu0 %v237_v13  ;;  %v106_v29 = vsel %vm102_vm7, %v105_v27, %v100_v26  ;;  %v111_v30 = vstv %s647_s9  ;;  %s682_s15 = sld [smem:[#allocation3 + $0xe]]  ;;  %p541_p10 = scmp.ne.s32.totalorder %s369_s7, %s540_s8 }
  0x31   :  { %461 = vmatprep.subr.mxu0 %v236_v17  ;;  %vm156_vm11 = vcmp.eq.s32.totalorder %v658_v20, %v106_v29  ;;  %v113_v31 = vsel %vm109_vm8, %v111_v30, 0  ;;  %v117_v32 = vstv %s650_s10  ;;  %s689_s16 = sld [smem:[#allocation3 + $0xf]]  ;;  %p545_p11 = scmp.lt.s32.totalorder %s369_s7, %s369_s7 }
  0x32   :  { %462 = vmatpush3.msra.mxu0 %v236_v17  ;;  %479 = vmatprep.mubr.msk.f32.mxu0 %vm156_vm11, %v583_v34  ;;  %v119_v35 = vsel %vm115_vm9, %v117_v32, %v113_v31  ;;  %v123_v36 = vstv %s656_s11  ;;  %vm151_vm11 = vcmp.eq.s32.totalorder %v645_v15, 15  ;;  %s162_s17 = sld [smem:[#allocation9]]  ;;  %p546_p12 = scmp.lt.s32.totalorder %s540_s8, %s540_s8 }
  0x33   :  { %463 = vmatprep.subr.mxu0 %v235_v23  ;;  %v125_v37 = vsel %vm121_vm10, %v123_v36, %v119_v35  ;;  %v129_v38 = vstv %s664_s12  ;;  %s412_s18 = sld [smem:[#allocation9 + $0x1]] }
  0x34   :  { %464 = vmatpush3.msra.mxu0 %v235_v23  ;;  %v131_v40 = vsel %vm127_vm12, %v129_v38, %v125_v37  ;;  %v135_v41 = vstv %s670_s13  ;;  %s413_s19 = sld [smem:[#allocation9 + $0x2]]  ;;  %p547_p13 = por %p546_p12, %p545_p11 }
  0x35   :  { %465 = vmatprep.subr.mxu0 %v234_v28  ;;  %v137_v42 = vsel %vm133_vm13, %v135_v41, %v131_v40  ;;  %v141_v43 = vstv %s676_s14  ;;  %s414_s20 = sld [smem:[#allocation9 + $0x3]] }
  0x36   :  { %466 = vmatpush3.msra.mxu0 %v234_v28  ;;  %v143_v45 = vsel %vm764_vm14, %v141_v43, %v137_v42  ;;  %v147_v46 = vstv %s682_s15  ;;  %s415_s21 = sld [smem:[#allocation9 + $0x4]]  ;;  %p548_p0 = pnand %p547_p13, %p541_p10 }
  0x37   :  { %467 = vmatprep.subr.mxu0 %v233_v33  ;;  %v149_v48 = vsel %vm145_vm15, %v147_v46, %v143_v45  ;;  %v153_v49 = vstv %s689_s16  ;;  %s416_s22 = sld [smem:[#allocation9 + $0x5]] }
  0x38   :  { %468 = vmatpush3.msra.mxu0 %v233_v33  ;;  %v155_v51 = vsel %vm151_vm11, %v153_v49, %v149_v48  ;;  %v163_v53 = vstv %s162_s17  ;;  %s417_s23 = sld [smem:[#allocation9 + $0x6]] }
  0x39   :  { %469 = vmatprep.subr.mxu0 %v232_v39  ;;  %vm157_vm14 = vcmp.eq.s32.totalorder %v658_v20, %v155_v51  ;;  %v164_v54 = vsel %vm60_vm0, %v163_v53, 0  ;;  %v167_v55 = vstv %s412_s18  ;;  %s418_s24 = sld [smem:[#allocation9 + $0x7]] }
  0x3a   :  { %470 = vmatpush3.msra.mxu0 %v232_v39  ;;  %v168_v56 = vsel %vm66_vm1, %v167_v55, %v164_v54  ;;  %v171_v57 = vstv %s413_s19  ;;  %s419_s25 = sld [smem:[#allocation9 + $0x8]]  ;;  %vm765_vm1 = vcmp.eq.s32.totalorder %v645_v15, 13 }
  0x3b   :  { %471 = vmatprep.subr.mxu0 %v231_v44  ;;  %v172_v58 = vsel %vm72_vm2, %v171_v57, %v168_v56  ;;  %v175_v59 = vstv %s414_s20  ;;  %s420_s26 = sld [smem:[#allocation9 + $0x9]] }
  0x3c   :  { %472 = vmatpush3.msra.mxu0 %v231_v44  ;;  %v176_v60 = vsel %vm78_vm3, %v175_v59, %v172_v58  ;;  %v179_v61 = vstv %s415_s21  ;;  %s421_s27 = sld [smem:[#allocation9 + $0xa]] }
  0x3d   :  { %473 = vmatprep.subr.mxu0 %v230_v47  ;;  %v180_v62 = vsel %vm84_vm4, %v179_v61, %v176_v60  ;;  %v183_v63 = vstv %s416_s22  ;;  %s422_s28 = sld [smem:[#allocation9 + $0xb]] }
  0x3e   :  { %474 = vmatpush3.msra.mxu0 %v230_v47  ;;  %v184_v0 = vsel %vm90_vm5, %v183_v63, %v180_v62  ;;  %v187_v1 = vstv %s417_s23  ;;  %s423_s29 = sld [smem:[#allocation9 + $0xc]] }
  0x3f   :  { %475 = vmatprep.subr.mxu0 %v229_v50  ;;  %v188_v3 = vsel %vm96_vm6, %v187_v1, %v184_v0  ;;  %v191_v5 = vstv %s418_s24  ;;  %s424_s30 = sld [smem:[#allocation9 + $0xd]] }
  0x40   :  { %476 = vmatpush3.msra.mxu0 %v229_v50  ;;  %v192_v7 = vsel %vm102_vm7, %v191_v5, %v188_v3  ;;  %v195_v9 = vstv %s419_s25  ;;  %s425_s2 = sld [smem:[#allocation9 + $0xe]] }
  0x41   :  { %477 = vmatprep.subr.mxu0 %v228_v52  ;;  %vm226_vm0 = vcmp.eq.s32.totalorder %v658_v20, %v192_v7  ;;  %v197_v10 = vsel %vm109_vm8, %v195_v9, 0  ;;  %v199_v11 = vstv %s420_s26  ;;  %s426_s5 = sld [smem:[#allocation9 + $0xf]] }
  0x42   :  { %478 = vmatpush3.msra.mxu0 %v228_v52  ;;  %v201_v4 = vsel %vm115_vm9, %v199_v11, %v197_v10  ;;  %v203_v14 = vstv %s421_s27 }
  0x43   :  { %480 = vmatmul.mubr.msk.f32.vlgmr.msra.gmra.mxu0 %vm157_vm14, %v583_v34  ;;  %v205_v19 = vsel %vm121_vm10, %v203_v14, %v201_v4  ;;  %v207_v21 = vstv %s422_s28 }
  0x44   :  { %v209_v23 = vsel %vm127_vm12, %v207_v21, %v205_v19  ;;  %v211_v24 = vstv %s423_s29 }
  0x45   :  { %v213_v25 = vsel %vm133_vm13, %v211_v24, %v209_v23  ;;  %v215_v26 = vstv %s424_s30 }
  0x46   :  { %v217_v27 = vsel %vm765_vm1, %v215_v26, %v213_v25  ;;  %v219_v28 = vstv %s425_s2 }
  0x47   :  { %v221_v29 = vsel %vm145_vm15, %v219_v28, %v217_v27  ;;  %v223_v30 = vstv %s426_s5 }
  0x48   :  { %v225_v32 = vsel %vm151_vm11, %v223_v30, %v221_v29 }
  0x49   :  { %vm227_vm2 = vcmp.eq.s32.totalorder %v658_v20, %v225_v32 }
 0x103   :  { %v481_v2 = vpop.f32.mrf.mxu0 }
 0x104   :  { %320 = vst [vmem:[#allocation11 + $0x8] sm:$0xff] %v481_v2  ;;  %v342_v34 = vsel %vm227_vm2, %v481_v2, 0.0 }
 0x105   :  { %v310_v6 = vpop.f32.mrf.mxu0 }
 0x106   :  { %319 = vst [vmem:[#allocation11] sm:$0xff] %v310_v6  ;;  %321 = vmax.xlane.f32.xlu0 %v310_v6  ;;  %v341_v8 = vsel %vm226_vm0, %v310_v6, 0.0 }
 0x10a   :  { %323 = vmax.xlane.f32.xlu0 %v481_v2 }
 0x10e   :  { %343 = vadd.xlane.f32.xlu0 %v341_v8 }
 0x18f   :  { %v322_v12 = vpop.xlane.xlu0 %321 }
 0x190   :  { %v325_v13 = vsub.f32 %v310_v6, %v322_v12 }
 0x192   :  { %v327_v16 = vmul.f32 1.442695, %v325_v13 }
 0x193   :  { %v324_v17 = vpop.xlane.xlu0 %323 }
 0x194   :  { %492 = vpow2.f32 %v327_v16  ;;  %v326_v18 = vsub.f32 %v481_v2, %v324_v17 }
 0x196   :  { %v329_v22 = vmul.f32 1.442695, %v326_v18 }
 0x198   :  { %494 = vpow2.f32 %v329_v22 }
 0x1a1   :  { %v493_v31 = vpop.eup %492 }
 0x1a2   :  { %331 = vadd.xlane.f32.xlu1 %v493_v31 }
 0x1a5   :  { %v495_v33 = vpop.eup %494 }
 0x1a6   :  { %333 = vadd.xlane.f32.xlu1 %v495_v33 }
 0x1aa   :  { %345 = vadd.xlane.f32.xlu1 %v342_v34 }
 0x1ab   :  { %551 = shalt.err (!%p548_p0)
}
 0x1ac   :  { %374 = dma.vmem_to_hbm [thread:$0]  %s369_s7, 256, %s762_s3, [#allocation5], %s581_s0, %s581_s0, %s582_s1   ;;  %v344_v41 = vpop.xlane.xlu0 %343  ;;  %vm357_vm3 = vcmask 0  }
 0x1ad   :  { %s585_s0 = smov [#allocation12]  }
 0x22b   :  { %v332_v15 = vpop.xlane.xlu1 %331 }
 0x22c   :  { %496 = vlog2.f32 %v332_v15 }
 0x22f   :  { %v334_v20 = vpop.xlane.xlu1 %333 }
 0x230   :  { %498 = vlog2.f32 %v334_v20 }
 0x233   :  { %v346_v42 = vpop.xlane.xlu1 %345 }
 0x239   :  { %v497_v35 = vpop.eup %496 }
 0x23a   :  { %v336_v36 = vmul.f32 0.6931472, %v497_v35 }
 0x23c   :  { %v339_v38 = vadd.f32 %v336_v36, %v322_v12 }
 0x23d   :  { %v499_v37 = vpop.eup %498 }
 0x23e   :  { %v338_v39 = vmul.f32 0.6931472, %v499_v37  ;;  %v347_v43 = vsub.f32 %v339_v38, %v344_v41 }
 0x240   :  { %v340_v40 = vadd.f32 %v338_v39, %v324_v17 }
 0x242   :  { %v348_v44 = vsub.f32 %v340_v40, %v346_v42 }
 0x244   :  { %v349_v45 = vadd.f32 %v348_v44, %v347_v43 }
 0x246   :  { %v350_v46 = vrot.slane %v349_v45, 4 }
 0x248   :  { %v351_v47 = vadd.f32 %v350_v46, %v349_v45 }
 0x24a   :  { %v352_v48 = vrot.slane %v351_v47, 2 }
 0x24c   :  { %v353_v49 = vadd.f32 %v352_v48, %v351_v47 }
 0x24e   :  { %v354_v50 = vrot.slane %v353_v49, 1 }
 0x250   :  { %v355_v51 = vadd.f32 %v354_v50, %v353_v49 }
 0x252   :  { %v356_v52 = vmul.f32 0.0625, %v355_v51 }
 0x254   :  { %358 = vst.msk [vmem:[#allocation2] sm:$0x1] %vm357_vm3, %v356_v52 }
 0x25b   :  { %v359_v53 = vld [vmem:[#allocation2] sm:$0x1] }
 0x25c   :  { %482 = vpush %v359_v53 }
 0x28d   :  { %s483_s3 = spop %482 }
 0x28e   :  { %362 = sst [smem:[#allocation12]] %s483_s3 }
 0x28f   :  { %382 = dma.smem_to_hbm %s585_s0, 16, %s763_s4, [#allocation7]  }
 0x290   :  { %574 = dma.done.wait [#allocation5], 256  }
 0x291   :  { %575 = vsyncadd [#allocation5], 4294967040 }
 0x292   :  { %576 = dma.done.wait [#allocation7], 16  }
 0x293   :  { %577 = vsyncadd [#allocation7], 4294967280 }
 0x294   :  { %389 = sfence }
 0x295   :  { %390 = vsyncpa [#allocation4], 1 }
 0x296   :  { %391 = vsyncpa [#allocation5], 1 }
 0x297   :  { %392 = vsyncpa [#allocation6], 1 }
 0x298   :  { %393 = vsyncpa [#allocation7], 1 }
 0x299   :  { %394 = vsyncpa [#allocation8], 1 }

</bundles_post_ra>
